<compile_context>
chip_gen: v7x
topology: tpu7x:2x2x1
jax: 0.10.0
libtpu: 0.0.40
codegen_flags: <defaults>
</compile_context>

<pallas_src>
import functools

import jax
import jax.numpy as jnp
from jax.experimental import pallas as pl
from jax.experimental.pallas import tpu as pltpu

LANE = 128      # f32 lane width
SUBLANE = 8     # f32 sublane height


def _round_up(v, m):
    return ((v + m - 1) // m) * m


def _vmem_budget_bytes():
    try:
        cap = pltpu.get_tpu_info().vmem_capacity_bytes
    except Exception:
        cap = 64 * 1024 * 1024          # conservative fallback (v7x per-TC VMEM)
    return int(cap * 3 // 4)            # leave headroom for the compiler


# ---------------------------------------------------------------------------
# Kernel A: fused single pass — whole (C, S) slab of one batch item in VMEM.
# x is read from HBM exactly once and written once.
# ---------------------------------------------------------------------------
def _scse3d_fused_kernel(x_ref, w1t_ref, b1c_ref, w2t_ref, b2c_ref,
                         wsp_ref, bsp_ref, o_ref, *, inv_s):
    x = x_ref[0].astype(jnp.float32)                          # (C, S)

    # Channel gate: tiny FC-ReLU-FC-sigmoid on a (C, 1) column.  Weights are
    # pre-transposed in the wrapper so there are no in-kernel transposes.
    # Mosaic masks the ragged/padded lanes in the reduction; divide by true S.
    z = jnp.sum(x, axis=-1, keepdims=True) * inv_s            # (C, 1)
    h = jnp.maximum(
        jnp.dot(w1t_ref[...], z, preferred_element_type=jnp.float32)
        + b1c_ref[...], 0.0)                                  # (Hmid, 1)
    s_ch = jax.nn.sigmoid(
        jnp.dot(w2t_ref[...], h, preferred_element_type=jnp.float32)
        + b2c_ref[...])                                       # (C, 1)

    # Spatial gate: 1x1x1 conv == per-channel weighted sum (pure VPU work).
    s_sp = jax.nn.sigmoid(
        jnp.sum(x * wsp_ref[...], axis=0, keepdims=True) + bsp_ref[0, 0])

    o_ref[0] = jnp.maximum(x * s_ch, x * s_sp).astype(o_ref.dtype)


# ---------------------------------------------------------------------------
# Kernel B: tiled recalibration pass (channel gate precomputed in plain JAX).
# Block of x: (1, C, TS); fully vectorized VPU work, no Python channel loop.
# ---------------------------------------------------------------------------
def _scse3d_apply_kernel(x_ref, sch_ref, wsp_ref, bsp_ref, o_ref):
    x = x_ref[0].astype(jnp.float32)                          # (C, TS)
    s_sp = jax.nn.sigmoid(
        jnp.sum(x * wsp_ref[...], axis=0, keepdims=True) + bsp_ref[0, 0])
    o_ref[0] = jnp.maximum(x * sch_ref[0], x * s_sp).astype(o_ref.dtype)


# ---------------------------------------------------------------------------
# Wrapper
# ---------------------------------------------------------------------------
def sc_squeeze_excitation_3d(x_ncdhw, params, *, force_tiled=False,
                             max_block_elems=None):
    """x_ncdhw: (N, C, D, H, W).  params: dict of SE weights (see init_params)."""
    n, c, d, h, w = x_ncdhw.shape
    s = d * h * w
    dtype = x_ncdhw.dtype
    itemsize = jnp.dtype(dtype).itemsize
    x3 = x_ncdhw.reshape(n, c, s)                    # free row-major reshape

    w1 = params["w1"].astype(jnp.float32)            # (C, Hmid)
    b1 = params["b1"].astype(jnp.float32)            # (1, Hmid)
    w2 = params["w2"].astype(jnp.float32)            # (Hmid, C)
    b2 = params["b2"].astype(jnp.float32)            # (1, C)
    wsp = params["wsp"].astype(jnp.float32)          # (1, C)
    bsp = params["bsp"].astype(jnp.float32)          # (1, 1)
    hmid = w1.shape[1]

    budget = _vmem_budget_bytes()
    c_phys = _round_up(c, SUBLANE)                   # VMEM sublane padding
    s_lanes = _round_up(s, LANE)                     # VMEM lane padding

    # Physical VMEM for the fused path: in + out double-buffered (input dtype)
    # plus ~3 full-size f32 temporaries of the elementwise pipeline.
    fused_bytes = c_phys * s_lanes * (4 * itemsize + 3 * 4)

    # ---- fused single-pass path (1 HBM read + 1 HBM write of x) -----------
    if (not force_tiled) and fused_bytes <= budget:
        kernel = functools.partial(_scse3d_fused_kernel, inv_s=1.0 / float(s))
        out3 = pl.pallas_call(
            kernel,
            out_shape=jax.ShapeDtypeStruct((n, c, s), dtype),
            grid=(n,),
            in_specs=[
                pl.BlockSpec((1, c, s), lambda i: (i, 0, 0)),      # x slab
                pl.BlockSpec((hmid, c), lambda i: (0, 0)),         # w1^T
                pl.BlockSpec((hmid, 1), lambda i: (0, 0)),         # b1 column
                pl.BlockSpec((c, hmid), lambda i: (0, 0)),         # w2^T
                pl.BlockSpec((c, 1), lambda i: (0, 0)),            # b2 column
                pl.BlockSpec((c, 1), lambda i: (0, 0)),            # wsp column
                pl.BlockSpec(memory_space=pltpu.MemorySpace.SMEM), # bsp scalar
            ],
            out_specs=pl.BlockSpec((1, c, s), lambda i: (i, 0, 0)),
            compiler_params=pltpu.CompilerParams(
                dimension_semantics=("parallel",),
                vmem_limit_bytes=budget),
        )(x3, w1.T, b1.T, w2.T, b2.T, wsp.T, bsp)
        return out3.reshape(n, c, d, h, w)

    # ---- tiled two-pass path ------------------------------------------------
    # Pass 1 (plain JAX): channel gate from one XLA reduce over the exact data.
    z = jnp.mean(x3, axis=-1, dtype=jnp.float32)               # (N, C)
    hh = jnp.maximum(z @ w1 + b1, 0.0)
    s_ch = jax.nn.sigmoid(hh @ w2 + b2)                        # (N, C)
    s_ch_col = s_ch[:, :, None]                                # (N, C, 1)
    wsp_col = wsp.T                                            # (C, 1)

    # Pass 2 (Pallas): stream (1, C, TS) tiles.  Target ~4-8 MiB physical per
    # x tile; double-buffered in + out + f32 temporaries stay under budget.
    target_blk = max(1 << 22, min(1 << 23, budget // 8))
    ts_cap = max(LANE, (target_blk // (c_phys * itemsize)) // LANE * LANE)
    if max_block_elems is not None:
        ts_cap = max(LANE, min(ts_cap, (max_block_elems // LANE) * LANE))
    if ts_cap >= s:
        ts, n_tiles = s, 1        # single full-extent tile (no (8,128) rule)
    else:
        n_tiles = pl.cdiv(s, ts_cap)
        ts = _round_up(pl.cdiv(s, n_tiles), LANE)              # balanced tiles
        n_tiles = pl.cdiv(s, ts)

    out3 = pl.pallas_call(
        _scse3d_apply_kernel,
        out_shape=jax.ShapeDtypeStruct((n, c, s), dtype),
        grid=(n, n_tiles),
        in_specs=[
            pl.BlockSpec((1, c, ts), lambda i, t: (i, 0, t)),      # x tile
            pl.BlockSpec((1, c, 1), lambda i, t: (i, 0, 0)),       # s_ch col
            pl.BlockSpec((c, 1), lambda i, t: (0, 0)),             # wsp col
            pl.BlockSpec(memory_space=pltpu.MemorySpace.SMEM),     # bsp scalar
        ],
        out_specs=pl.BlockSpec((1, c, ts), lambda i, t: (i, 0, t)),
        compiler_params=pltpu.CompilerParams(
            dimension_semantics=("parallel", "parallel"),
            vmem_limit_bytes=budget),
    )(x3, s_ch_col, wsp_col, bsp)
    return out3.reshape(n, c, d, h, w)


# ---------------------------------------------------------------------------
# Reference + params
# ---------------------------------------------------------------------------
def _reference(x, params):
    """Plain-JAX reference mirroring the PyTorch forward."""
    z = jnp.mean(x, axis=(2, 3, 4))                               # (N, C)
    h = jnp.maximum(z @ params["w1"] + params["b1"], 0.0)         # (N, Hmid)
    s_ch = jax.nn.sigmoid(h @ params["w2"] + params["b2"])        # (N, C)
    s_sp = jax.nn.sigmoid(
        jnp.einsum("ncdhw,c->ndhw", x, params["wsp"][0]) + params["bsp"][0, 0]
    )[:, None]                                                    # (N,1,D,H,W)
    x_channel = x * s_ch[:, :, None, None, None]
    x_spatial = x * s_sp
    return jnp.maximum(x_channel, x_spatial)


def init_params(key, in_channels, channel_neurons):
    k1, k2, k3, k4, k5, k6 = jax.random.split(key, 6)
    return {
        # Linear(in_channels -> channel_neurons); stored as (in, out) for x @ W
        "w1": jax.random.normal(k1, (in_channels, channel_neurons), jnp.float32) * 0.1,
        "b1": jax.random.normal(k2, (1, channel_neurons), jnp.float32) * 0.1,
        # Linear(channel_neurons -> in_channels)
        "w2": jax.random.normal(k3, (channel_neurons, in_channels), jnp.float32) * 0.1,
        "b2": jax.random.normal(k4, (1, in_channels), jnp.float32) * 0.1,
        # Conv3d(in_channels -> 1, kernel 1x1x1) == per-channel weight vector
        "wsp": jax.random.normal(k5, (1, in_channels), jnp.float32) * 0.1,
        "bsp": jax.random.normal(k6, (1, 1), jnp.float32) * 0.1,
    }


if __name__ == "__main__":
    key = jax.random.PRNGKey(0)
    kx, kp, kx2, kp2 = jax.random.split(key, 4)

    # Case 1: C < 8, spatial size a multiple of 128 (S = 512).
    N, C, D, H, W = 2, 4, 8, 8, 8
    x = jax.random.normal(kx, (N, C, D, H, W), jnp.float32)
    params = init_params(kp, C, 16)
    ref = _reference(x, params)

    out_fused = jax.block_until_ready(sc_squeeze_excitation_3d(x, params))
    assert out_fused.shape == ref.shape
    assert jnp.allclose(out_fused, ref, atol=1e-5, rtol=1e-5), "fused mismatch"

    # Tiled path with multiple aligned tiles (2 x 256).
    out_tiled = jax.block_until_ready(
        sc_squeeze_excitation_3d(x, params, force_tiled=True,
                                 max_block_elems=256))
    assert jnp.allclose(out_tiled, ref, atol=1e-5, rtol=1e-5), "tiled mismatch"

    # Case 2: ragged spatial size (S = 135, not a multiple of 128), C = 6.
    N2, C2, D2, H2, W2 = 1, 6, 3, 5, 9
    x2 = jax.random.normal(kx2, (N2, C2, D2, H2, W2), jnp.float32)
    params2 = init_params(kp2, C2, 12)
    ref2 = _reference(x2, params2)

    out2_f = jax.block_until_ready(sc_squeeze_excitation_3d(x2, params2))
    assert jnp.allclose(out2_f, ref2, atol=1e-5, rtol=1e-5), "fused ragged mismatch"

    # Tiled path with a partial last tile (128 + 7 valid elements).
    out2_t = jax.block_until_ready(
        sc_squeeze_excitation_3d(x2, params2, force_tiled=True,
                                 max_block_elems=128))
    assert jnp.allclose(out2_t, ref2, atol=1e-5, rtol=1e-5), "tiled ragged mismatch"

    print("KERNEL_OK")
</pallas_src>

<mosaic_0001>
module attributes {stable_mosaic.version = 11 : i64} {
  func.func @_scse3d_fused_kernel(%arg0: i32, %arg1: memref<1x4x512xf32, #tpu.memory_space<vmem>>, %arg2: memref<16x4xf32, #tpu.memory_space<vmem>>, %arg3: memref<16x1xf32, #tpu.memory_space<vmem>>, %arg4: memref<4x16xf32, #tpu.memory_space<vmem>>, %arg5: memref<4x1xf32, #tpu.memory_space<vmem>>, %arg6: memref<4x1xf32, #tpu.memory_space<vmem>>, %arg7: memref<1x1xf32, #tpu.memory_space<smem>>, %arg8: memref<1x4x512xf32, #tpu.memory_space<vmem>>) attributes {dimension_semantics = [#tpu.dimension_semantics<parallel>], iteration_bounds = array<i64: 2>, scalar_prefetch = 0 : i64, scratch_operands = 0 : i64, tpu.core_type = #tpu.core_type<tc>, window_params = [{transform_indices = @transform_0, window_bounds = array<i64: 1, 4, 512>}, {pipeline_mode = #tpu.pipeline_mode<synchronous>, transform_indices = @transform_1, window_bounds = array<i64: 16, 4>}, {pipeline_mode = #tpu.pipeline_mode<synchronous>, transform_indices = @transform_2, window_bounds = array<i64: 16, 1>}, {pipeline_mode = #tpu.pipeline_mode<synchronous>, transform_indices = @transform_3, window_bounds = array<i64: 4, 16>}, {pipeline_mode = #tpu.pipeline_mode<synchronous>, transform_indices = @transform_4, window_bounds = array<i64: 4, 1>}, {pipeline_mode = #tpu.pipeline_mode<synchronous>, transform_indices = @transform_5, window_bounds = array<i64: 4, 1>}, {transform_indices = @transform_6, window_bounds = array<i64: 1, 1>}, {transform_indices = @transform_7, window_bounds = array<i64: 1, 4, 512>}]} {
    %c0 = arith.constant 0 : index
    %c0_0 = arith.constant 0 : index
    %c0_1 = arith.constant 0 : index
    %0 = vector.load %arg1[%c0, %c0_0, %c0_1] : memref<1x4x512xf32, #tpu.memory_space<vmem>>, vector<1x4x512xf32>
    %1 = vector.shape_cast %0 : vector<1x4x512xf32> to vector<4x512xf32>
    %cst = arith.constant dense<0.000000e+00> : vector<4xf32>
    %2 = vector.multi_reduction <add>, %1, %cst [1] : vector<4x512xf32> to vector<4xf32>
    %3 = vector.shape_cast %2 : vector<4xf32> to vector<4x1xf32>
    %cst_2 = arith.constant 0.001953125 : f32
    %4 = vector.broadcast %cst_2 : f32 to vector<4x1xf32>
    %5 = arith.mulf %3, %4 : vector<4x1xf32>
    %c0_3 = arith.constant 0 : index
    %c0_4 = arith.constant 0 : index
    %6 = vector.load %arg2[%c0_3, %c0_4] : memref<16x4xf32, #tpu.memory_space<vmem>>, vector<16x4xf32>
    %cst_5 = arith.constant dense<0.000000e+00> : vector<16x1xf32>
    %7 = tpu.matmul %6, %5, %cst_5 {dimension_numbers = #tpu.dot_dimension_numbers<[1], [0], [0], [1], [0, 0, 1, 1], [], []>} : vector<16x4xf32>, vector<4x1xf32>, vector<16x1xf32> -> vector<16x1xf32>
    %c0_6 = arith.constant 0 : index
    %c0_7 = arith.constant 0 : index
    %8 = vector.load %arg3[%c0_6, %c0_7] : memref<16x1xf32, #tpu.memory_space<vmem>>, vector<16x1xf32>
    %9 = arith.addf %7, %8 : vector<16x1xf32>
    %cst_8 = arith.constant 0.000000e+00 : f32
    %10 = vector.broadcast %cst_8 : f32 to vector<16x1xf32>
    %11 = arith.maximumf %9, %10 : vector<16x1xf32>
    %c0_9 = arith.constant 0 : index
    %c0_10 = arith.constant 0 : index
    %12 = vector.load %arg4[%c0_9, %c0_10] : memref<4x16xf32, #tpu.memory_space<vmem>>, vector<4x16xf32>
    %cst_11 = arith.constant dense<0.000000e+00> : vector<4x1xf32>
    %13 = tpu.matmul %12, %11, %cst_11 {dimension_numbers = #tpu.dot_dimension_numbers<[1], [0], [0], [1], [0, 0, 1, 1], [], []>} : vector<4x16xf32>, vector<16x1xf32>, vector<4x1xf32> -> vector<4x1xf32>
    %c0_12 = arith.constant 0 : index
    %c0_13 = arith.constant 0 : index
    %14 = vector.load %arg5[%c0_12, %c0_13] : memref<4x1xf32, #tpu.memory_space<vmem>>, vector<4x1xf32>
    %15 = arith.addf %13, %14 : vector<4x1xf32>
    %16 = arith.negf %15 : vector<4x1xf32>
    %17 = math.exp %16 : vector<4x1xf32>
    %cst_14 = arith.constant 1.000000e+00 : f32
    %18 = vector.broadcast %cst_14 : f32 to vector<4x1xf32>
    %19 = arith.addf %18, %17 : vector<4x1xf32>
    %20 = arith.divf %18, %19 : vector<4x1xf32>
    %c0_15 = arith.constant 0 : index
    %c0_16 = arith.constant 0 : index
    %21 = vector.load %arg6[%c0_15, %c0_16] : memref<4x1xf32, #tpu.memory_space<vmem>>, vector<4x1xf32>
    %22 = vector.broadcast %21 : vector<4x1xf32> to vector<4x512xf32>
    %23 = arith.mulf %1, %22 : vector<4x512xf32>
    %cst_17 = arith.constant dense<0.000000e+00> : vector<512xf32>
    %24 = vector.multi_reduction <add>, %23, %cst_17 [0] : vector<4x512xf32> to vector<512xf32>
    %25 = vector.shape_cast %24 : vector<512xf32> to vector<1x512xf32>
    %c0_18 = arith.constant 0 : index
    %c0_19 = arith.constant 0 : index
    %26 = memref.load %arg7[%c0_18, %c0_19] : memref<1x1xf32, #tpu.memory_space<smem>>
    %27 = vector.broadcast %26 : f32 to vector<1x512xf32>
    %28 = arith.addf %25, %27 : vector<1x512xf32>
    %29 = arith.negf %28 : vector<1x512xf32>
    %30 = math.exp %29 : vector<1x512xf32>
    %cst_20 = arith.constant 1.000000e+00 : f32
    %31 = vector.broadcast %cst_20 : f32 to vector<1x512xf32>
    %32 = arith.addf %31, %30 : vector<1x512xf32>
    %33 = arith.divf %31, %32 : vector<1x512xf32>
    %34 = vector.broadcast %20 : vector<4x1xf32> to vector<4x512xf32>
    %35 = arith.mulf %1, %34 : vector<4x512xf32>
    %36 = vector.broadcast %33 : vector<1x512xf32> to vector<4x512xf32>
    %37 = arith.mulf %1, %36 : vector<4x512xf32>
    %38 = arith.maximumf %35, %37 : vector<4x512xf32>
    %c0_21 = arith.constant 0 : index
    %c0_22 = arith.constant 0 : index
    %c0_23 = arith.constant 0 : index
    %39 = vector.load %arg8[%c0_21, %c0_22, %c0_23] : memref<1x4x512xf32, #tpu.memory_space<vmem>>, vector<1x4x512xf32>
    %40 = vector.shape_cast %39 : vector<1x4x512xf32> to vector<4x512xf32>
    %41 = vector.shape_cast %38 : vector<4x512xf32> to vector<1x4x512xf32>
    tpu.vector_store %arg8[%c0_21, %c0_22, %c0_23], %41 {strides = array<i32>} : memref<1x4x512xf32, #tpu.memory_space<vmem>>, vector<1x4x512xf32>,
    return
  }
  func.func @transform_0(%arg0: i32) -> (i32, i32, i32) {
    %c0_i32 = arith.constant 0 : i32
    %c0_i32_0 = arith.constant 0 : i32
    %c0_i32_1 = arith.constant 0 : i32
    return %arg0, %c0_i32, %c0_i32_0 : i32, i32, i32
  }
  func.func @transform_1(%arg0: i32) -> (i32, i32) {
    %c0_i32 = arith.constant 0 : i32
    %c0_i32_0 = arith.constant 0 : i32
    %c0_i32_1 = arith.constant 0 : i32
    return %c0_i32, %c0_i32_0 : i32, i32
  }
  func.func @transform_2(%arg0: i32) -> (i32, i32) {
    %c0_i32 = arith.constant 0 : i32
    %c0_i32_0 = arith.constant 0 : i32
    %c0_i32_1 = arith.constant 0 : i32
    return %c0_i32, %c0_i32_0 : i32, i32
  }
  func.func @transform_3(%arg0: i32) -> (i32, i32) {
    %c0_i32 = arith.constant 0 : i32
    %c0_i32_0 = arith.constant 0 : i32
    %c0_i32_1 = arith.constant 0 : i32
    return %c0_i32, %c0_i32_0 : i32, i32
  }
  func.func @transform_4(%arg0: i32) -> (i32, i32) {
    %c0_i32 = arith.constant 0 : i32
    %c0_i32_0 = arith.constant 0 : i32
    %c0_i32_1 = arith.constant 0 : i32
    return %c0_i32, %c0_i32_0 : i32, i32
  }
  func.func @transform_5(%arg0: i32) -> (i32, i32) {
    %c0_i32 = arith.constant 0 : i32
    %c0_i32_0 = arith.constant 0 : i32
    %c0_i32_1 = arith.constant 0 : i32
    return %c0_i32, %c0_i32_0 : i32, i32
  }
  func.func @transform_6(%arg0: i32) -> (i32, i32) {
    %c0_i32 = arith.constant 0 : i32
    %c0_i32_0 = arith.constant 0 : i32
    %c0_i32_1 = arith.constant 0 : i32
    return %c0_i32, %c0_i32_0 : i32, i32
  }
  func.func @transform_7(%arg0: i32) -> (i32, i32, i32) {
    %c0_i32 = arith.constant 0 : i32
    %c0_i32_0 = arith.constant 0 : i32
    %c0_i32_1 = arith.constant 0 : i32
    return %arg0, %c0_i32, %c0_i32_0 : i32, i32, i32
  }
}

</mosaic_0001>

<bundles_post_ra>
// kernel: tpu_custom_call.1
= control target key start
LH: loop header
LB: loop body
LE: loop exit
PB: predicated region body
PF: predicated region fallthrough
CT: control target
= control target key end

     0   :  { %s1027_s0 = inlined_call_operand.vmem [shape: f32[2,4,512], index: 0, kind: input, shape index: {}]   ;;  %s1028_s1 = inlined_call_operand.vmem [shape: f32[16,4], index: 1, kind: input, shape index: {}]   ;;  %s1029_s2 = inlined_call_operand.vmem [shape: f32[16,1], index: 2, kind: input, shape index: {}]   ;;  %s1030_s3 = inlined_call_operand.vmem [shape: f32[4,16], index: 3, kind: input, shape index: {}]   ;;  %s1031_s4 = inlined_call_operand.vmem [shape: f32[4,1], index: 4, kind: input, shape index: {}]   ;;  %s1032_s5 = inlined_call_operand.vmem [shape: f32[4,1], index: 5, kind: input, shape index: {}]   ;;  %s1033_s6 = inlined_call_operand.<no memory space> [shape: f32[1,1], index: 6, kind: input, shape index: {}]   ;;  %s1034_s7 = inlined_call_operand.hbm [shape: f32[2,4,512], index: 7, kind: output, shape index: {}]  }
   0x1   :  { %12 = sst [smem:[#allocation2]] %s1033_s6 }
   0x2   :  { %13 = vsyncpa [#allocation4], 0 }
   0x3   :  { %15 = vsyncpa [#allocation4 + $0x1], 0  ;;  %s876_s26 = smov 0   ;;  %s878_s27 = smov 0  }
   0x4   :  { %s880_s28 = smov 0   ;;  %s882_s29 = smov 0  }
   0x5 LB: > { %s897_s6 = sadd.s32 4294967295, %s825_s29   ;;  %s651_s30 = sadd.s32 4294967294, %s825_s29   ;;  %s825_s29 = sphi %s882_s29, %s1040_s29   ;;  %s821_s28 = sphi %s880_s28, %s1039_s28   ;;  %s817_s27 = sphi %s878_s27, %s1038_s27   ;;  %s813_s26 = sphi %s876_s26, %s1037_s26  }
   0x6   : > { %s901_s8 = sadd.s32 1, %s825_s29   ;;  %s180_s9 = sadd.s32 1, %s821_s28 }
   0x7   : > { %s177_s10 = ssub.s32 %s825_s29, %s901_s8  ;;  %p190_p0 = scmp.ne.s32.totalorder %s821_s28, %s817_s27 }
   0x8   : > { %p178_p1 = scmp.eq.s32.totalorder %s177_s10, 0  ;;  %p191_p2 = scmp.eq.s32.totalorder %s897_s6, 1 }
   0x9   : > { %p196_p3 = scmp.ne.s32.totalorder %s817_s27, %s813_s26  ;;  %p197_p4 = scmp.eq.s32.totalorder %s651_s30, 1 }
   0xa   : > { %s912_s11 = scalar_select %p178_p1, %s821_s28, %s180_s9  }
   0xb   : > { %p914_p5 = por %p191_p2, %p190_p0  ;;  %p918_p6 = por %p197_p4, %p196_p3 }
   0xc   : > { %p654_p7 = scmp.ge.s32.totalorder %s825_s29, 1  ;;  %p241_p8 = scmp.lt.s32.totalorder %s825_s29, 3 }
   0xe   : > { %p242_p9 = pnand %p654_p7, %p241_p8 }
   0xf   : > { %p273_p10 = scmp.lt.s32.totalorder (!%p242_p9), %s897_s6, 1  ;;  %vm286_vm0 = vcmask (!%p242_p9), 1043456   ;;  %v297_v11 = vld [vmem:[%s1028_s1] sm:$0xff] (!%p242_p9)  ;;  %vm301_vm1 = vcmask (!%p242_p9), 31744   ;;  %v298_v14 = vld [vmem:[%s1028_s1 + $0x8] sm:$0xff] (!%p242_p9)  ;;  %v827_v15 = vmov (!%p242_p9), 0.0|0.0   ;;  %v478_v39 = vlaneseq (!%p242_p9) }
  0x10   : > { %245 = sbr.rel (%p242_p9) target bundleno = 793 (0x319), region = 48  ;;  %682 = vmatprep.mubr.msk.f32.mxu0 (!%p242_p9), %vm301_vm1, %v297_v11  ;;  %692 = vmatprep.subr.bf16.mxu1 (!%p242_p9), %v827_v15  ;;  %vm828_vm2 = vmmov (!%p242_p9), 0   ;;  %v829_v16 = vmov (!%p242_p9), 0.0   ;;  %v470_v17 = vld [vmem:[%s1032_s5] sm:$0xf] (!%p242_p9)  ;;  %v830_v18 = vmov (!%p242_p9), 0  }
  0x11   : > { %689 = vmatprep.mubr.msk.f32.mxu1 (!%p242_p9), %vm828_vm2, %v829_v16  ;;  %739 = vset.pattern.permute.xlu0 (!%p242_p9), %v830_v18  ;;  %v300_v19 = vld [vmem:[%s1029_s2 + $0x8] sm:$0xff] (!%p242_p9)  ;;  %v299_v20 = vld [vmem:[%s1029_s2] sm:$0xff] (!%p242_p9)  ;;  %vm390_vm3 = vcmask (!%p242_p9), 130048   ;;  %v831_v37 = vmov (!%p242_p9), 839922192   ;;  %v479_v41 = vshrl.u32 (!%p242_p9), %v478_v39, 7 }
  0x12   : > { %740 = vset.pattern.permute.xlu1 (!%p242_p9), %v830_v18  ;;  %v388_v28 = vld [vmem:[%s1030_s3] sm:$0xf] (!%p242_p9)  ;;  %v476_v38 = vunpack.c.l.s4 (!%p242_p9), %v831_v37  ;;  %s270_s19 = sand.u32 (!%p242_p9), 1, %s817_s27   ;;  %s673_s21 = sshll.u32 (!%p242_p9), %s897_s6, 8 }
  0x13   : > { %v389_v29 = vld [vmem:[%s1031_s4] sm:$0xf] (!%p242_p9)  ;;  %s655_s20 = sshll.u32 (!%p242_p9), %s270_s19, 4  ;;  %s985_s30 = scalar_lea.hbm (!%p242_p9), %s1034_s7, %s673_s21 }
  0x14   : > { %v477_v40 = vunpack.c.0.s8 (!%p242_p9), %v476_v38  ;;  %s272_s22 = scalar_lea.vmem (!%p242_p9), [#allocation3], %s655_s20  ;;  %s832_s10 = smov (!%p242_p9), [#allocation3]  }
  0x15   : > { %s592_s23 = sshll.u32 (!%p242_p9), %s272_s22, 4  ;;  %s987_s23 = int_to_ptr.vmem [resolvable:$true] %s592_s23 }
  0x16   : > { %v966_v42 = vsub.s32 (!%p242_p9), %v477_v40, %v479_v41  ;;  %s763_s9 = scalar_lea.vmem (!%p242_p9), %s987_s23, 256 }
  0x17   : > { %s274_s14 = scalar_select %p273_p10, %s897_s6, 1 }
  0x18   : > { %s578_s6 = scalar_lea.sflag [#allocation4], %s270_s19  ;;  %p764_p11 = scmp.ne.s32.totalorder %s987_s23, %s763_s9 }
  0x19   : > { %s672_s15 = sshll.u32 %s274_s14, 4  ;;  %s767_s14 = sshll.u32 %s832_s10, 4  ;;  %s768_s14 = int_to_ptr.vmem [resolvable:$false] %s767_s14 }
  0x1a   : > { %s277_s18 = scalar_lea.vmem %s1027_s0, %s672_s15  ;;  %p765_p12 = pnand %p764_p11, %p914_p5 }
  0x1b   : > { %v929_v0 = vld [vmem:[%s277_s18] sm:$0xff]  ;;  %v931_v1 = vld [vmem:[%s277_s18 + $0x8] sm:$0xff]  ;;  %s519_s18 = sld [smem:[#allocation2]]  ;;  %s769_s15 = scalar_lea.vmem %s768_s14, 512 }
  0x1c   : > { %v282_v2 = vcombine.high %v929_v0, %v929_v0  ;;  %v283_v3 = vcombine.high %v931_v1, %v931_v1  ;;  %v287_v4 = vsel %vm286_vm0, %v929_v0, 0.0  ;;  %v290_v6 = vsel %vm286_vm0, %v931_v1, 0.0  ;;  %p766_p13 = pneg %p765_p12  ;;  %p770_p0 = scmp.lt.s32.totalorder %s987_s23, %s768_s14 }
  0x1d   : > { %p771_p1 = scmp.lt.s32.totalorder %s769_s15, %s763_s9 }
  0x1e   : > { %v288_v5 = vsel %vm286_vm0, %v282_v2, 0.0  ;;  %v292_v8 = vsel %vm286_vm0, %v283_v3, 0.0 }
  0x1f   : > { %v289_v7 = vadd.f32 %v288_v5, %v287_v4  ;;  %p772_p2 = por %p771_p1, %p770_p0 }
  0x21   : > { %v291_v9 = vadd.f32 %v290_v6, %v289_v7  ;;  %p773_p3 = pnand %p772_p2, %p766_p13 }
  0x23   : > { %v293_v10 = vadd.f32 %v292_v8, %v291_v9 }
  0x25   : > { %294 = vadd.xlane.f32.xlu0 %v293_v10 }
  0x3b   : > { %473 = vperm.xlu0 %739, %v470_v17  }
  0xb2   : > { %v295_v12 = vpop.xlane.xlu0 %294 }
  0xb3   : > { %v296_v13 = vmul.f32 0.001953125, %v295_v12  ;;  %v520_v12 = vstv %s519_s18 }
  0xb5   : > { %680 = vmatprep.subr.msk.mxu0 %vm286_vm0, %v296_v13 }
  0xb6   : > { %681 = vmatpush3.msk.msra.mxu0 %vm286_vm0, %v296_v13 }
  0xb7   : > { %683 = vmatmul.mubr.msk.f32.vlgmr.msra.gmra.mrb[0].mxu0 %vm301_vm1, %v298_v14 }
  0xba   : > { %v474_v43 = vpop.permute.xlu0 %473 }
  0xbb   : > { %v481_v44 = vrot.slane %v474_v43, %v966_v42 }
  0xbd   : > { %v483_v45 = vmul.f32 %v481_v44, %v929_v0  ;;  %v484_v46 = vmul.f32 %v481_v44, %v931_v1 }
  0xbf   : > { %v487_v47 = vcombine.high %v483_v45, %v483_v45  ;;  %v488_v48 = vcombine.high %v484_v46, %v484_v46  ;;  %v491_v49 = vsel %vm286_vm0, %v483_v45, 0.0  ;;  %v505_v50 = vsel %vm286_vm0, %v484_v46, 0.0 }
  0xc0   : > { %v492_v52 = vrot.slane %v491_v49, 4  ;;  %v506_v54 = vrot.slane %v505_v50, 4 }
  0xc1   : > { %v498_v51 = vsel %vm286_vm0, %v487_v47, 0.0  ;;  %v512_v53 = vsel %vm286_vm0, %v488_v48, 0.0 }
  0xc2   : > { %v499_v55 = vrot.slane %v498_v51, 4  ;;  %v513_v56 = vrot.slane %v512_v53, 4  ;;  %v493_v57 = vadd.f32 %v492_v52, %v491_v49  ;;  %v507_v58 = vadd.f32 %v506_v54, %v505_v50 }
  0xc4   : > { %v500_v59 = vadd.f32 %v499_v55, %v498_v51  ;;  %v514_v60 = vadd.f32 %v513_v56, %v512_v53  ;;  %v494_v61 = vrot.slane %v493_v57, 2  ;;  %v508_v62 = vrot.slane %v507_v58, 2 }
  0xc6   : > { %v501_v63 = vrot.slane %v500_v59, 2  ;;  %v515_v2 = vrot.slane %v514_v60, 2  ;;  %v495_v3 = vadd.f32 %v494_v61, %v493_v57  ;;  %v509_v4 = vadd.f32 %v508_v62, %v507_v58 }
  0xc8   : > { %v502_v5 = vadd.f32 %v501_v63, %v500_v59  ;;  %v516_v6 = vadd.f32 %v515_v2, %v514_v60  ;;  %v496_v7 = vrot.slane %v495_v3, 1  ;;  %v510_v8 = vrot.slane %v509_v4, 1 }
  0xca   : > { %v503_v9 = vrot.slane %v502_v5, 1  ;;  %v517_v10 = vrot.slane %v516_v6, 1  ;;  %v497_v11 = vadd.f32 %v496_v7, %v495_v3  ;;  %v511_v13 = vadd.f32 %v510_v8, %v509_v4 }
  0xcc   : > { %v504_v14 = vadd.f32 %v503_v9, %v502_v5  ;;  %v518_v15 = vadd.f32 %v517_v10, %v516_v6  ;;  %v521_v16 = vadd.f32 %v520_v12, %v497_v11  ;;  %v523_v17 = vadd.f32 %v520_v12, %v511_v13 }
  0xce   : > { %v522_v18 = vadd.f32 %v520_v12, %v504_v14 }
 0x18a   : > { %v684_v21 = vpop.f32.mrb[0].mxu0 }
 0x18b   : > { %v383_v22 = vadd.f32 %v684_v21, %v300_v19  ;;  %v377_v23 = vpop.f32.mrb[1].mxu0  ;;  %v524_v19 = vadd.f32 %v520_v12, %v518_v15  ;;  %v665_v21 = vmul.f32 -1.442695, %v523_v17 }
 0x18c   : > { %v378_v24 = vadd.f32 %v377_v23, %v299_v20  ;;  %v663_v20 = vmul.f32 -1.442695, %v521_v16 }
 0x18d   : > { %v387_v25 = vmax.f32 %v383_v22, 0.0  ;;  %v664_v22 = vmul.f32 -1.442695, %v522_v18  ;;  %v666_v23 = vmul.f32 -1.442695, %v524_v19 }
 0x18e   : > { %v386_v26 = vmax.f32 %v378_v24, 0.0 }
 0x190   : > { %v693_v27 = vpack.c.bf16 %v387_v25, %v386_v26 }
 0x192   : > { %694 = vmatpush3.bf16.msra.mxu1 %v693_v27 }
 0x195   : > { %690 = vmatmul.mubr.msk.f32.vlgmr.msra.gmra.mrb[0].mxu1 %vm390_vm3, %v388_v28 }
 0x268   : > { %v460_v30 = vpop.f32.mrb[0].mxu1 }
 0x269   : > { %v461_v31 = vadd.f32 %v460_v30, %v389_v29  ;;  %v691_v32 = vpop.f32.mrb[1].mxu1 }
 0x26b   : > { %v662_v33 = vmul.f32 -1.442695, %v461_v31 }
 0x26d   : > { %743 = vpow2.f32 %v662_v33 }
 0x277   : > { %v744_v34 = vpop.eup %743 }
 0x278   : > { %v467_v35 = vadd.f32 1.0, %v744_v34 }
 0x27a   : > { %745 = vrcp.f32 %v467_v35 }
 0x27b   : > { %747 = vpow2.f32 %v663_v20 }
 0x27c   : > { %749 = vpow2.f32 %v665_v21 }
 0x27d   : > { %751 = vpow2.f32 %v664_v22 }
 0x27e   : > { %753 = vpow2.f32 %v666_v23 }
 0x284   : > { %v746_v36 = vpop.eup %745 }
 0x285   : > { %551 = vperm.xlu1 %740, %v746_v36   ;;  %v748_v24 = vpop.eup %747 }
 0x286   : > { %v750_v25 = vpop.eup %749  ;;  %v537_v28 = vadd.f32 1.0, %v748_v24 }
 0x287   : > { %v752_v26 = vpop.eup %751  ;;  %v539_v29 = vadd.f32 1.0, %v750_v25 }
 0x288   : > { %v754_v27 = vpop.eup %753  ;;  %v538_v30 = vadd.f32 1.0, %v752_v26  ;;  %755 = vrcp.f32 %v537_v28 }
 0x289   : > { %v540_v31 = vadd.f32 1.0, %v754_v27  ;;  %757 = vrcp.f32 %v539_v29 }
 0x28a   : > { %759 = vrcp.f32 %v538_v30 }
 0x28b   : > { %761 = vrcp.f32 %v540_v31 }
 0x292   : > { %v756_v32 = vpop.eup %755 }
 0x293   : > { %v758_v33 = vpop.eup %757 }
 0x294   : > { %v760_v34 = vpop.eup %759 }
 0x295   : > { %v762_v35 = vpop.eup %761  ;;  %v567_v36 = vcombine.low %v756_v32, %v760_v34 }
 0x296   : > { %v568_v37 = vcombine.low %v758_v33, %v762_v35 }
 0x297   : > { %v571_v43 = vmul.f32 %v567_v36, %v929_v0 }
 0x298   : > { %v572_v44 = vmul.f32 %v568_v37, %v931_v1 }
 0x304   : > { %v552_v38 = vpop.permute.xlu1 %551 }
 0x305   : > { %v559_v39 = vrot.slane %v552_v38, %v966_v42 }
 0x307   : > { %v561_v40 = vmul.f32 %v559_v39, %v929_v0  ;;  %v562_v41 = vmul.f32 %v559_v39, %v931_v1 }
 0x309   : > { %v573_v45 = vmax.f32 %v561_v40, %v571_v43  ;;  %v574_v46 = vmax.f32 %v562_v41, %v572_v44 }
 0x30b   : > { %575 = vst [vmem:[%s272_s22] sm:$0xff] %v573_v45  ;;  %576 = vst [vmem:[%s272_s22 + $0x8] sm:$0xff] %v574_v46 }
 0x30c   : > { %776 = shalt.err (!%p773_p3)
}
 0x30d   : > { %s777_s16 = scalar_lea.hbm %s985_s30, 256  ;;  %s781_s19 = scalar_lea.hbm %s1034_s7, 512 }
 0x30e   : > { %p778_p4 = scmp.ne.s32.totalorder %s985_s30, %s777_s16  ;;  %p782_p9 = scmp.lt.u32.totalorder %s985_s30, %s1034_s7 }
 0x30f   : > { %p783_p10 = scmp.lt.u32.totalorder %s781_s19, %s777_s16  ;;  %p785_p12 = scmp.lt.u32.totalorder %s777_s16, %s985_s30 }
 0x310   : > { %p779_p7 = pnand %p778_p4, %p914_p5 }
 0x311   : > { %p784_p11 = por %p783_p10, %p782_p9 }
 0x312   : > { %p780_p8 = pneg %p779_p7 }
 0x313   : > { %p786_p13 = por %p785_p12, %p784_p11 }
 0x315   : > { %p787_p0 = pnand %p786_p13, %p780_p8 }
 0x317   : > { %790 = shalt.err (!%p787_p0)
}
 0x318   : > { %695 = dma.vmem_to_hbm [thread:$0]  (%p914_p5), %s987_s23, 256, %s985_s30, %s578_s6  }
 0x319 PF: > { %p701_p1 = scmp.ge.s32.totalorder %s825_s29, 2  ;;  %s604_s22 = sand.u32 1, %s813_s26  }
 0x31a   : > { %s605_s24 = scalar_lea.sflag [#allocation4], %s604_s22 }
 0x31b   : > { %p698_p2 = pnand %p701_p1, %p918_p6 }
 0x31d   : > { %808 = dma.done.wait (!%p698_p2), %s605_s24, 256  }
 0x31e   : > { %810 = vsyncadd (!%p698_p2), %s605_s24, 4294967040  ;;  %p18_p3 = scmp.ge.s32.totalorder %s901_s8, 4   ;;  %s1037_s26 = smov %s817_s27 }
 0x31f   : > { %s1038_s27 = smov %s821_s28  ;;  %s1039_s28 = smov %s912_s11 }
 0x320   : > { %s1040_s29 = smov %s901_s8  ;;  %20 = sbr.rel (!%p18_p3) target bundleno = 5 (0x5), region = 83 }
 0x327   :  { %610 = vsyncpa [#allocation4], 1 }
 0x328   :  { %612 = vsyncpa [#allocation4 + $0x1], 1 }

</bundles_post_ra>
